<compile_context>
chip_gen: v6e
topology: v6e:2x2x1
jax: 0.10.0
libtpu: 0.0.40
codegen_flags: <defaults>
</compile_context>

<pallas_src>
import functools

import jax
import jax.numpy as jnp
from jax.experimental import pallas as pl
from jax.experimental.pallas import tpu as pltpu


def _round_up(x, m):
    return (x + m - 1) // m * m


def _block_target_bytes():
    """Per-input f32 block-size target (bytes), tuned per chip generation."""
    try:
        info = pltpu.get_tpu_info()
        vmem = int(getattr(info, "vmem_capacity_bytes", 128 << 20))
    except Exception:  # be bulletproof: fall back to the conservative target
        vmem = 128 << 20
    if vmem <= (64 << 20):
        # v7x-class: 64 MiB VMEM / ~3.2 TB/s HBM -> bigger blocks amortize the
        # ~0.35 us per-grid-step overhead; footprint still << 32 MiB scoped.
        return 7 << 19        # 3.5 MiB
    # v5e / v6e class.
    return 2 << 20            # 2 MiB


def _choose_block_rows(n_rows, n_cols):
    lanes = _round_up(max(n_cols, 1), 128)
    target_elems = _block_target_bytes() // 4
    rows = max(32, (target_elems // lanes) // 32 * 32)   # multiple of 32 (int8/bf16 packing)
    if rows >= n_rows:
        return n_rows                                     # full-dim block (exempt from (8,128))
    return rows


def _masked_bce_kernel(o_ref, t_ref, m_ref, out_ref, acc_loss, acc_cnt,
                       *, block_rows, total_rows):
    c = pl.program_id(0)          # "core" (parallel) axis
    i = pl.program_id(1)          # sequential row-block (reduction) axis
    nb = pl.num_programs(1)

    @pl.when(i == 0)
    def _():
        acc_loss[...] = jnp.zeros_like(acc_loss)
        acc_cnt[...] = jnp.zeros_like(acc_cnt)

    o = o_ref[...].astype(jnp.float32)
    t = t_ref[...].astype(jnp.float32)
    m = m_ref[...].astype(jnp.float32)

    # torch.nn.BCELoss clamps the log terms at -100 to avoid infinities.
    # Refactored form saves one multiply per element (no f32 FMA on v5e/v6e).
    log_o = jnp.maximum(jnp.log(o), -100.0)
    log_1mo = jnp.maximum(jnp.log(1.0 - o), -100.0)
    loss = -(log_1mo + t * (log_o - log_1mo))

    # Unclamped logical block index.  The index_map may clamp duplicated /
    # fully-out-of-range blocks onto the last real block; the validity mask
    # below is derived from this unclamped index so they contribute zero.
    lb = c * nb + i
    is_full = (lb + 1) * block_rows <= total_rows

    @pl.when(is_full)
    def _():
        # Fast path: every row valid -> no iota / compare / selects.
        acc_loss[...] += jnp.sum(loss * m, axis=0, keepdims=True)
        acc_cnt[...] += jnp.sum(m, axis=0, keepdims=True)

    @pl.when(jnp.logical_not(is_full))
    def _():
        # Slow path (ragged tail / duplicated block): gate with selects so
        # NaN/Inf from unspecified padded reads can never propagate.
        row_ids = lb * block_rows + jax.lax.broadcasted_iota(
            jnp.int32, (block_rows, 1), 0)
        valid = row_ids < total_rows                       # (block_rows, 1)
        mv = jnp.where(valid, m, 0.0)
        lv = jnp.where(valid, loss * m, 0.0)
        acc_loss[...] += jnp.sum(lv, axis=0, keepdims=True)
        acc_cnt[...] += jnp.sum(mv, axis=0, keepdims=True)

    @pl.when(i == nb - 1)
    def _():
        # Single lane-dense (1, 128) store: [sum, count, 0, 0, ...].
        lane = jax.lax.broadcasted_iota(jnp.int32, out_ref.shape, 1)
        s = jnp.sum(acc_loss[...])
        n = jnp.sum(acc_cnt[...])
        out_ref[...] = jnp.where(lane == 0, s, jnp.where(lane == 1, n, 0.0))


def masked_bce_loss(output, target, mask, *, block_rows=None):
    """output: (B, D) float in [0,1]; target/mask: (B, D) in {0,1}.

    target / mask may be any real dtype (bf16, int8, ...) -- they are upcast
    inside the kernel (narrow dtypes cut HBM traffic).  Returns a float32
    scalar (nan if the mask is all zeros, matching torch's mean over an empty
    selection).
    """
    if output.ndim != 2:
        output = output.reshape(-1, output.shape[-1])
        target = target.reshape(-1, target.shape[-1])
        mask = mask.reshape(-1, mask.shape[-1])
    B, D = output.shape
    assert target.shape == (B, D) and mask.shape == (B, D)

    if block_rows is None:
        block_rows = _choose_block_rows(B, D)
    block_rows = min(block_rows, B)

    n_blocks = pl.cdiv(B, block_rows)
    # Always split the row-blocks across both TensorCores when there is more
    # than one block (odd counts included).  Duplicated/OOB blocks are clamped
    # in the index_map and zeroed by the in-kernel validity mask.
    n_cores = 2 if n_blocks > 1 else 1
    nb = pl.cdiv(n_blocks, n_cores)
    last_block = n_blocks - 1

    kernel = functools.partial(_masked_bce_kernel,
                               block_rows=block_rows, total_rows=B)

    def in_idx(c, i):
        lb = c * nb + i
        return (jnp.minimum(lb, last_block), 0)   # clamp; kernel masks duplicates

    in_spec = pl.BlockSpec((block_rows, D), in_idx)

    # Explicit scoped-VMEM budget: 3 double-buffered input streams + tiny
    # accumulators, with generous headroom (safe on v5e's 16 MiB default and
    # well under v7x's 64 MiB physical).
    lanes = _round_up(D, 128)
    in_bytes_per_row = lanes * (output.dtype.itemsize
                                + target.dtype.itemsize + mask.dtype.itemsize)
    vmem_est = 2 * block_rows * in_bytes_per_row + (1 << 20)
    vmem_limit = int(min(max(2 * vmem_est, 32 << 20), 56 << 20))

    cost = pl.CostEstimate(
        flops=6 * B * D,
        transcendentals=2 * B * D,
        bytes_accessed=B * D * (output.dtype.itemsize + target.dtype.itemsize
                                + mask.dtype.itemsize) + 4 * 128 * n_cores,
    )

    out = pl.pallas_call(
        kernel,
        out_shape=jax.ShapeDtypeStruct((1, 128 * n_cores), jnp.float32),
        grid_spec=pltpu.PrefetchScalarGridSpec(
            num_scalar_prefetch=0,
            grid=(n_cores, nb),
            in_specs=[in_spec, in_spec, in_spec],
            out_specs=pl.BlockSpec((1, 128), lambda c, i: (0, c)),
            scratch_shapes=[
                pltpu.VMEM((1, D), jnp.float32),   # masked loss sum accumulator
                pltpu.VMEM((1, D), jnp.float32),   # valid count accumulator
            ],
        ),
        compiler_params=pltpu.CompilerParams(
            dimension_semantics=("parallel", "arbitrary"),
            vmem_limit_bytes=vmem_limit,
        ),
        cost_estimate=cost,
    )(output, target, mask)

    parts = out.reshape(n_cores, 128)
    total = jnp.sum(parts[:, 0])
    count = jnp.sum(parts[:, 1])
    return total / count


def masked_bce_ref(output, target, mask):
    o = output.astype(jnp.float32)
    t = target.astype(jnp.float32)
    m = mask.astype(jnp.float32)
    log_o = jnp.maximum(jnp.log(o), -100.0)
    log_1mo = jnp.maximum(jnp.log(1.0 - o), -100.0)
    loss = -(t * log_o + (1.0 - t) * log_1mo)
    return jnp.sum(loss * m) / jnp.sum(m)


if __name__ == "__main__":
    def make_inputs(key, B, D, mask_dtype=jnp.bfloat16):
        k1, k2, k3 = jax.random.split(key, 3)
        # output in [0,1] (post-sigmoid, f32); target/mask in {0,1} as narrow
        # dtypes (the kernel upcasts internally; bytes ~ wall time here).
        output = jax.nn.sigmoid(jax.random.normal(k1, (B, D), dtype=jnp.float32))
        target = (jax.random.uniform(k2, (B, D)) > 0.5).astype(jnp.bfloat16)
        mask = (jax.random.uniform(k3, (B, D)) > 0.3).astype(mask_dtype)
        return output, target, mask

    # 1) Small shape per the module (batch_size x D): single full-dim block.
    o1, t1, m1 = make_inputs(jax.random.PRNGKey(0), 4, 32)
    l1 = jax.block_until_ready(masked_bce_loss(o1, t1, m1))
    r1 = masked_bce_ref(o1, t1, m1)
    assert jnp.allclose(l1, r1, atol=1e-5, rtol=1e-5), (l1, r1)

    # 2) Multiple grid steps, ragged last row-block, 2-way core axis
    #    (4 row-blocks of 32 over 100 rows; core 1 owns the ragged block).
    o2, t2, m2 = make_inputs(jax.random.PRNGKey(1), 100, 96)
    l2 = jax.block_until_ready(masked_bce_loss(o2, t2, m2, block_rows=32))
    r2 = masked_bce_ref(o2, t2, m2)
    assert jnp.allclose(l2, r2, atol=1e-5, rtol=1e-5), (l2, r2)

    # 3) Odd block count (3 blocks over 72 rows): always-split core axis with a
    #    clamped duplicated block on core 1 (must contribute zero), plus an
    #    int8 mask to exercise the narrow-dtype byte diet.
    o3, t3, m3 = make_inputs(jax.random.PRNGKey(2), 72, 96, mask_dtype=jnp.int8)
    l3 = jax.block_until_ready(masked_bce_loss(o3, t3, m3, block_rows=32))
    r3 = masked_bce_ref(o3, t3, m3)
    assert jnp.allclose(l3, r3, atol=1e-5, rtol=1e-5), (l3, r3)

    print("KERNEL_OK")
</pallas_src>

<mosaic_0001>
module attributes {stable_mosaic.version = 11 : i64} {
  func.func @_masked_bce_kernel(%arg0: i32, %arg1: i32, %arg2: memref<4x32xf32, #tpu.memory_space<vmem>>, %arg3: memref<4x32xbf16, #tpu.memory_space<vmem>>, %arg4: memref<4x32xbf16, #tpu.memory_space<vmem>>, %arg5: memref<1x128xf32, #tpu.memory_space<vmem>>, %arg6: memref<1x32xf32, #tpu.memory_space<vmem>>, %arg7: memref<1x32xf32, #tpu.memory_space<vmem>>) attributes {dimension_semantics = [#tpu.dimension_semantics<parallel>, #tpu.dimension_semantics<arbitrary>], iteration_bounds = array<i64: 1, 1>, scalar_prefetch = 0 : i64, scratch_operands = 2 : i64, tpu.core_type = #tpu.core_type<tc>, window_params = [{transform_indices = @transform_0, window_bounds = array<i64: 4, 32>}, {transform_indices = @transform_1, window_bounds = array<i64: 4, 32>}, {transform_indices = @transform_2, window_bounds = array<i64: 4, 32>}, {transform_indices = @transform_3, window_bounds = array<i64: 1, 128>}]} {
    %c0_i32 = arith.constant 0 : i32
    %0 = arith.cmpi eq, %arg1, %c0_i32 : i32
    %1 = arith.extui %0 : i1 to i32
    %c0_i32_0 = arith.constant 0 : i32
    %2 = arith.cmpi ne, %1, %c0_i32_0 : i32
    scf.if %2 {
      %cst_15 = arith.constant 0.000000e+00 : f32
      %34 = vector.broadcast %cst_15 : f32 to vector<1x32xf32>
      %c0_16 = arith.constant 0 : index
      %c0_17 = arith.constant 0 : index
      %35 = vector.load %arg6[%c0_16, %c0_17] : memref<1x32xf32, #tpu.memory_space<vmem>>, vector<1x32xf32>
      tpu.vector_store %arg6[%c0_16, %c0_17], %34 {strides = array<i32>} : memref<1x32xf32, #tpu.memory_space<vmem>>, vector<1x32xf32>,
      %cst_18 = arith.constant 0.000000e+00 : f32
      %36 = vector.broadcast %cst_18 : f32 to vector<1x32xf32>
      %c0_19 = arith.constant 0 : index
      %c0_20 = arith.constant 0 : index
      %37 = vector.load %arg7[%c0_19, %c0_20] : memref<1x32xf32, #tpu.memory_space<vmem>>, vector<1x32xf32>
      tpu.vector_store %arg7[%c0_19, %c0_20], %36 {strides = array<i32>} : memref<1x32xf32, #tpu.memory_space<vmem>>, vector<1x32xf32>,
    } else {
    }
    %c0 = arith.constant 0 : index
    %c0_1 = arith.constant 0 : index
    %3 = vector.load %arg2[%c0, %c0_1] : memref<4x32xf32, #tpu.memory_space<vmem>>, vector<4x32xf32>
    %c0_2 = arith.constant 0 : index
    %c0_3 = arith.constant 0 : index
    %4 = vector.load %arg3[%c0_2, %c0_3] : memref<4x32xbf16, #tpu.memory_space<vmem>>, vector<4x32xbf16>
    %5 = arith.extf %4 : vector<4x32xbf16> to vector<4x32xf32>
    %c0_4 = arith.constant 0 : index
    %c0_5 = arith.constant 0 : index
    %6 = vector.load %arg4[%c0_4, %c0_5] : memref<4x32xbf16, #tpu.memory_space<vmem>>, vector<4x32xbf16>
    %7 = arith.extf %6 : vector<4x32xbf16> to vector<4x32xf32>
    %8 = math.log %3 : vector<4x32xf32>
    %cst = arith.constant -1.000000e+02 : f32
    %9 = vector.broadcast %cst : f32 to vector<4x32xf32>
    %10 = arith.maximumf %8, %9 : vector<4x32xf32>
    %cst_6 = arith.constant 1.000000e+00 : f32
    %11 = vector.broadcast %cst_6 : f32 to vector<4x32xf32>
    %12 = arith.subf %11, %3 : vector<4x32xf32>
    %13 = math.log %12 : vector<4x32xf32>
    %cst_7 = arith.constant -1.000000e+02 : f32
    %14 = vector.broadcast %cst_7 : f32 to vector<4x32xf32>
    %15 = arith.maximumf %13, %14 : vector<4x32xf32>
    %16 = arith.subf %10, %15 : vector<4x32xf32>
    %17 = arith.mulf %5, %16 : vector<4x32xf32>
    %18 = arith.addf %15, %17 : vector<4x32xf32>
    %cst_8 = arith.constant 0.000000e+00 : f32
    %19 = vector.broadcast %cst_8 : f32 to vector<4x32xf32>
    %20 = arith.subf %19, %18 : vector<4x32xf32>
    %c1_i32 = arith.constant 1 : i32
    %21 = arith.muli %arg0, %c1_i32 : i32
    %22 = arith.addi %21, %arg1 : i32
    %c1_i32_9 = arith.constant 1 : i32
    %23 = arith.addi %22, %c1_i32_9 : i32
    %c4_i32 = arith.constant 4 : i32
    %24 = arith.muli %23, %c4_i32 : i32
    %c4_i32_10 = arith.constant 4 : i32
    %25 = arith.cmpi sle, %24, %c4_i32_10 : i32
    %26 = arith.extui %25 : i1 to i32
    %c0_i32_11 = arith.constant 0 : i32
    %27 = arith.cmpi ne, %26, %c0_i32_11 : i32
    scf.if %27 {
      %c0_15 = arith.constant 0 : index
      %c0_16 = arith.constant 0 : index
      %34 = vector.load %arg6[%c0_15, %c0_16] : memref<1x32xf32, #tpu.memory_space<vmem>>, vector<1x32xf32>
      %35 = arith.mulf %20, %7 : vector<4x32xf32>
      %cst_17 = arith.constant dense<0.000000e+00> : vector<32xf32>
      %36 = vector.multi_reduction <add>, %35, %cst_17 [0] : vector<4x32xf32> to vector<32xf32>
      %37 = vector.shape_cast %36 : vector<32xf32> to vector<1x32xf32>
      %38 = arith.addf %34, %37 : vector<1x32xf32>
      %c0_18 = arith.constant 0 : index
      %c0_19 = arith.constant 0 : index
      %39 = vector.load %arg6[%c0_18, %c0_19] : memref<1x32xf32, #tpu.memory_space<vmem>>, vector<1x32xf32>
      tpu.vector_store %arg6[%c0_18, %c0_19], %38 {strides = array<i32>} : memref<1x32xf32, #tpu.memory_space<vmem>>, vector<1x32xf32>,
      %c0_20 = arith.constant 0 : index
      %c0_21 = arith.constant 0 : index
      %40 = vector.load %arg7[%c0_20, %c0_21] : memref<1x32xf32, #tpu.memory_space<vmem>>, vector<1x32xf32>
      %cst_22 = arith.constant dense<0.000000e+00> : vector<32xf32>
      %41 = vector.multi_reduction <add>, %7, %cst_22 [0] : vector<4x32xf32> to vector<32xf32>
      %42 = vector.shape_cast %41 : vector<32xf32> to vector<1x32xf32>
      %43 = arith.addf %40, %42 : vector<1x32xf32>
      %c0_23 = arith.constant 0 : index
      %c0_24 = arith.constant 0 : index
      %44 = vector.load %arg7[%c0_23, %c0_24] : memref<1x32xf32, #tpu.memory_space<vmem>>, vector<1x32xf32>
      tpu.vector_store %arg7[%c0_23, %c0_24], %43 {strides = array<i32>} : memref<1x32xf32, #tpu.memory_space<vmem>>, vector<1x32xf32>,
    } else {
    }
    %true = arith.constant true
    %28 = arith.xori %25, %true : i1
    %29 = arith.extui %28 : i1 to i32
    %c0_i32_12 = arith.constant 0 : i32
    %30 = arith.cmpi ne, %29, %c0_i32_12 : i32
    scf.if %30 {
      %c4_i32_15 = arith.constant 4 : i32
      %34 = arith.muli %22, %c4_i32_15 : i32
      %35 = tpu.iota {dimensions = array<i32: 0>} : vector<4x1xi32>
      %36 = vector.broadcast %34 : i32 to vector<4x1xi32>
      %37 = arith.addi %36, %35 : vector<4x1xi32>
      %c4_i32_16 = arith.constant 4 : i32
      %38 = vector.broadcast %c4_i32_16 : i32 to vector<4x1xi32>
      %39 = arith.cmpi slt, %37, %38 : vector<4x1xi32>
      %cst_17 = arith.constant 0.000000e+00 : f32
      %40 = vector.shape_cast %39 : vector<4x1xi1> to vector<4x1xi1>
      %41 = vector.broadcast %40 : vector<4x1xi1> to vector<4x32xi1>
      %42 = vector.broadcast %cst_17 : f32 to vector<4x32xf32>
      %43 = arith.select %41, %7, %42 : vector<4x32xi1>, vector<4x32xf32>
      %44 = arith.mulf %20, %7 : vector<4x32xf32>
      %cst_18 = arith.constant 0.000000e+00 : f32
      %45 = vector.shape_cast %39 : vector<4x1xi1> to vector<4x1xi1>
      %46 = vector.broadcast %45 : vector<4x1xi1> to vector<4x32xi1>
      %47 = vector.broadcast %cst_18 : f32 to vector<4x32xf32>
      %48 = arith.select %46, %44, %47 : vector<4x32xi1>, vector<4x32xf32>
      %c0_19 = arith.constant 0 : index
      %c0_20 = arith.constant 0 : index
      %49 = vector.load %arg6[%c0_19, %c0_20] : memref<1x32xf32, #tpu.memory_space<vmem>>, vector<1x32xf32>
      %cst_21 = arith.constant dense<0.000000e+00> : vector<32xf32>
      %50 = vector.multi_reduction <add>, %48, %cst_21 [0] : vector<4x32xf32> to vector<32xf32>
      %51 = vector.shape_cast %50 : vector<32xf32> to vector<1x32xf32>
      %52 = arith.addf %49, %51 : vector<1x32xf32>
      %c0_22 = arith.constant 0 : index
      %c0_23 = arith.constant 0 : index
      %53 = vector.load %arg6[%c0_22, %c0_23] : memref<1x32xf32, #tpu.memory_space<vmem>>, vector<1x32xf32>
      tpu.vector_store %arg6[%c0_22, %c0_23], %52 {strides = array<i32>} : memref<1x32xf32, #tpu.memory_space<vmem>>, vector<1x32xf32>,
      %c0_24 = arith.constant 0 : index
      %c0_25 = arith.constant 0 : index
      %54 = vector.load %arg7[%c0_24, %c0_25] : memref<1x32xf32, #tpu.memory_space<vmem>>, vector<1x32xf32>
      %cst_26 = arith.constant dense<0.000000e+00> : vector<32xf32>
      %55 = vector.multi_reduction <add>, %43, %cst_26 [0] : vector<4x32xf32> to vector<32xf32>
      %56 = vector.shape_cast %55 : vector<32xf32> to vector<1x32xf32>
      %57 = arith.addf %54, %56 : vector<1x32xf32>
      %c0_27 = arith.constant 0 : index
      %c0_28 = arith.constant 0 : index
      %58 = vector.load %arg7[%c0_27, %c0_28] : memref<1x32xf32, #tpu.memory_space<vmem>>, vector<1x32xf32>
      tpu.vector_store %arg7[%c0_27, %c0_28], %57 {strides = array<i32>} : memref<1x32xf32, #tpu.memory_space<vmem>>, vector<1x32xf32>,
    } else {
    }
    %c0_i32_13 = arith.constant 0 : i32
    %31 = arith.cmpi eq, %arg1, %c0_i32_13 : i32
    %32 = arith.extui %31 : i1 to i32
    %c0_i32_14 = arith.constant 0 : i32
    %33 = arith.cmpi ne, %32, %c0_i32_14 : i32
    scf.if %33 {
      %34 = tpu.iota {dimensions = array<i32: 1>} : vector<1x128xi32>
      %c0_15 = arith.constant 0 : index
      %c0_16 = arith.constant 0 : index
      %35 = vector.load %arg6[%c0_15, %c0_16] : memref<1x32xf32, #tpu.memory_space<vmem>>, vector<1x32xf32>
      %36 = vector.shape_cast %35 : vector<1x32xf32> to vector<1x1x32xf32>
      %cst_17 = arith.constant dense<0.000000e+00> : vector<1xf32>
      %37 = vector.multi_reduction <add>, %36, %cst_17 [1, 2] : vector<1x1x32xf32> to vector<1xf32>
      %38 = vector.shape_cast %37 : vector<1xf32> to vector<1x1x1xf32>
      %39 = vector.extract %38[0, 0, 0] : f32 from vector<1x1x1xf32>
      %c0_18 = arith.constant 0 : index
      %c0_19 = arith.constant 0 : index
      %40 = vector.load %arg7[%c0_18, %c0_19] : memref<1x32xf32, #tpu.memory_space<vmem>>, vector<1x32xf32>
      %41 = vector.shape_cast %40 : vector<1x32xf32> to vector<1x1x32xf32>
      %cst_20 = arith.constant dense<0.000000e+00> : vector<1xf32>
      %42 = vector.multi_reduction <add>, %41, %cst_20 [1, 2] : vector<1x1x32xf32> to vector<1xf32>
      %43 = vector.shape_cast %42 : vector<1xf32> to vector<1x1x1xf32>
      %44 = vector.extract %43[0, 0, 0] : f32 from vector<1x1x1xf32>
      %c0_i32_21 = arith.constant 0 : i32
      %45 = vector.broadcast %c0_i32_21 : i32 to vector<1x128xi32>
      %46 = arith.cmpi eq, %34, %45 : vector<1x128xi32>
      %c1_i32_22 = arith.constant 1 : i32
      %47 = vector.broadcast %c1_i32_22 : i32 to vector<1x128xi32>
      %48 = arith.cmpi eq, %34, %47 : vector<1x128xi32>
      %cst_23 = arith.constant 0.000000e+00 : f32
      %49 = vector.broadcast %44 : f32 to vector<1x128xf32>
      %50 = vector.broadcast %cst_23 : f32 to vector<1x128xf32>
      %51 = arith.select %48, %49, %50 : vector<1x128xi1>, vector<1x128xf32>
      %52 = vector.broadcast %39 : f32 to vector<1x128xf32>
      %53 = arith.select %46, %52, %51 : vector<1x128xi1>, vector<1x128xf32>
      %c0_24 = arith.constant 0 : index
      %c0_25 = arith.constant 0 : index
      %54 = vector.load %arg5[%c0_24, %c0_25] : memref<1x128xf32, #tpu.memory_space<vmem>>, vector<1x128xf32>
      tpu.vector_store %arg5[%c0_24, %c0_25], %53 {strides = array<i32>} : memref<1x128xf32, #tpu.memory_space<vmem>>, vector<1x128xf32>,
    } else {
    }
    return
  }
  func.func @transform_0(%arg0: i32, %arg1: i32) -> (i32, i32) {
    %c1_i32 = arith.constant 1 : i32
    %0 = arith.muli %arg0, %c1_i32 : i32
    %1 = arith.addi %0, %arg1 : i32
    %c0_i32 = arith.constant 0 : i32
    %2 = arith.minsi %1, %c0_i32 : i32
    %c0_i32_0 = arith.constant 0 : i32
    %c0_i32_1 = arith.constant 0 : i32
    return %2, %c0_i32_0 : i32, i32
  }
  func.func @transform_1(%arg0: i32, %arg1: i32) -> (i32, i32) {
    %c1_i32 = arith.constant 1 : i32
    %0 = arith.muli %arg0, %c1_i32 : i32
    %1 = arith.addi %0, %arg1 : i32
    %c0_i32 = arith.constant 0 : i32
    %2 = arith.minsi %1, %c0_i32 : i32
    %c0_i32_0 = arith.constant 0 : i32
    %c0_i32_1 = arith.constant 0 : i32
    return %2, %c0_i32_0 : i32, i32
  }
  func.func @transform_2(%arg0: i32, %arg1: i32) -> (i32, i32) {
    %c1_i32 = arith.constant 1 : i32
    %0 = arith.muli %arg0, %c1_i32 : i32
    %1 = arith.addi %0, %arg1 : i32
    %c0_i32 = arith.constant 0 : i32
    %2 = arith.minsi %1, %c0_i32 : i32
    %c0_i32_0 = arith.constant 0 : i32
    %c0_i32_1 = arith.constant 0 : i32
    return %2, %c0_i32_0 : i32, i32
  }
  func.func @transform_3(%arg0: i32, %arg1: i32) -> (i32, i32) {
    %c0_i32 = arith.constant 0 : i32
    %c0_i32_0 = arith.constant 0 : i32
    return %c0_i32, %arg0 : i32, i32
  }
}

</mosaic_0001>

<bundles_post_ra>
// kernel: tpu_custom_call.1
= control target key start
LH: loop header
LB: loop body
LE: loop exit
PB: predicated region body
PF: predicated region fallthrough
CT: control target
= control target key end

     0   :  { %8 = vsyncpa [#allocation5], 0  ;;  %s355_s0 = inlined_call_operand.hbm [shape: f32[4,32], index: 0, kind: input, shape index: {}]   ;;  %s356_s1 = inlined_call_operand.hbm [shape: bf16[4,32], index: 1, kind: input, shape index: {}]   ;;  %s357_s2 = inlined_call_operand.vmem [shape: bf16[4,32], index: 2, kind: input, shape index: {}]   ;;  %s358_s3 = inlined_call_operand.hbm [shape: f32[1,128], index: 3, kind: output, shape index: {}]  }
   0x1   :  { %9 = vsyncpa [#allocation8], 0 }
   0x2   :  { %10 = vsyncpa [#allocation6], 0  ;;  %s311_s12 = smov [#allocation4]   ;;  %s312_s14 = smov [#allocation7]  }
   0x3   :  { %s22_s13 = sshll.u32 %s311_s12, 4  ;;  %s37_s15 = sshll.u32 %s312_s14, 4  ;;  %s23_s13 = int_to_ptr.vmem [resolvable:$true] %s22_s13  ;;  %s38_s15 = int_to_ptr.vmem [resolvable:$true] %s37_s15 }
   0x4   :  { %s253_s16 = scalar_lea.vmem %s23_s13, 64  ;;  %p258_p1 = scmp.lt.s32.totalorder %s23_s13, %s23_s13 }
   0x5   :  { %p254_p0 = scmp.ne.s32.totalorder %s23_s13, %s253_s16  ;;  %p259_p2 = scmp.lt.s32.totalorder %s253_s16, %s253_s16 }
   0x7   :  { %p260_p3 = por %p259_p2, %p258_p1 }
   0x9   :  { %p261_p4 = pnand %p260_p3, %p254_p0 }
   0xb   :  { %264 = shalt.err (!%p261_p4)
}
   0xc   :  { %25 = dma.hbm_to_vmem [thread:$0]  %s355_s0, 64, %s23_s13, [#allocation5]  }
   0xd   :  { %s273_s19 = scalar_lea.vmem %s38_s15, 32  ;;  %p278_p6 = scmp.lt.s32.totalorder %s38_s15, %s38_s15 }
   0xe   :  { %p274_p5 = scmp.ne.s32.totalorder %s38_s15, %s273_s19  ;;  %p279_p7 = scmp.lt.s32.totalorder %s273_s19, %s273_s19 }
  0x10   :  { %p280_p8 = por %p279_p7, %p278_p6 }
  0x12   :  { %p281_p9 = pnand %p280_p8, %p274_p5 }
  0x14   :  { %284 = shalt.err (!%p281_p9)
}
  0x15   :  { %40 = dma.hbm_to_vmem [thread:$0]  %s356_s1, 32, %s38_s15, [#allocation8]  }
  0x16   :  { %305 = dma.done.wait [#allocation5], 64  }
  0x17   :  { %306 = vsyncadd [#allocation5], 4294967232 }
  0x18   :  { %307 = dma.done.wait [#allocation8], 32  }
  0x19   :  { %308 = vsyncadd [#allocation8], 4294967264  ;;  %vm86_vm0 = vcmask 253952   ;;  %v313_v0 = vmov 0.0   ;;  %v89_v1 = vld [vmem:[#allocation4] sm:$0xf]  ;;  %v175_v54 = vlaneseq }
  0x1a   :  { %87 = vst.msk [vmem:[#allocation2] sm:$0x1] %vm86_vm0, %v313_v0  ;;  %88 = vst.msk [vmem:[#allocation3] sm:$0x1] %vm86_vm0, %v313_v0  ;;  %v92_v2 = vld [vmem:[%s357_s2] sm:$0x3]  ;;  %241 = vlog2.f32 %v89_v1 }
  0x1b   :  { %v93_v3 = vunpack.c.l.bf16 %v92_v2  ;;  %v97_v4 = vsub.f32 1.0, %v89_v1  ;;  %vm114_vm1 = vcmask 257024   ;;  %v90_v16 = vld [vmem:[#allocation7] sm:$0x3]  ;;  %v176_v55 = vand.u32 127, %v175_v54  ;;  %s314_s2 = smov [#allocation9]  }
  0x1c   :  { %v91_v20 = vunpack.c.l.bf16 %v90_v16  ;;  %s213_s23 = sshll.u32 %s314_s2, 4  ;;  %s214_s23 = int_to_ptr.vmem [resolvable:$true] %s213_s23 }
  0x1d   :  { %243 = vlog2.f32 %v97_v4  ;;  %v126_v5 = vsel %vm114_vm1, %v93_v3, 0.0  ;;  %vm201_vm2 = vcmp.eq.s32.totalorder %v176_v55, 1  ;;  %vm200_vm3 = vcmp.eq.s32.totalorder %v176_v55, 0  ;;  %s285_s25 = scalar_lea.vmem %s214_s23, 16  ;;  %s289_s26 = scalar_lea.vmem %s214_s23, 32 }
  0x1e   :  { %v127_v6 = vrot.slane %v126_v5, 4  ;;  %p286_p10 = scmp.ne.s32.totalorder %s214_s23, %s285_s25  ;;  %p290_p11 = scmp.lt.s32.totalorder %s214_s23, %s214_s23 }
  0x1f   :  { %p291_p12 = scmp.lt.s32.totalorder %s289_s26, %s285_s25 }
  0x20   :  { %v128_v7 = vadd.f32 %v127_v6, %v126_v5 }
  0x21   :  { %v125_v11 = vld [vmem:[#allocation3] sm:$0x1]  ;;  %v112_v33 = vld [vmem:[#allocation2] sm:$0x1]  ;;  %p292_p13 = por %p291_p12, %p290_p11 }
  0x22   :  { %v129_v8 = vrot.slane %v128_v7, 2 }
  0x23   :  { %p293_p0 = pnand %p292_p13, %p286_p10 }
  0x24   :  { %v130_v9 = vadd.f32 %v129_v8, %v128_v7 }
  0x26   :  { %v131_v10 = vrot.slane %v130_v9, 1 }
  0x27   :  { %v242_v12 = vpop.eup %241 }
  0x28   :  { %v132_v13 = vadd.f32 %v131_v10, %v130_v9  ;;  %v95_v14 = vmul.f32 0.6931472, %v242_v12 }
  0x2a   :  { %v244_v15 = vpop.eup %243  ;;  %v133_v17 = vadd.f32 %v132_v13, %v125_v11  ;;  %v96_v18 = vmax.f32 %v95_v14, -100.0 }
  0x2b   :  { %v99_v19 = vmul.f32 0.6931472, %v244_v15 }
  0x2c   :  { %134 = vst.msk [vmem:[#allocation3] sm:$0x1] %vm86_vm0, %v133_v17 }
  0x2d   :  { %v100_v21 = vmax.f32 %v99_v19, -100.0 }
  0x2f   :  { %v101_v22 = vsub.f32 %v96_v18, %v100_v21 }
  0x31   :  { %v102_v23 = vmul.f32 %v101_v22, %v91_v20 }
  0x33   :  { %v103_v24 = vadd.f32 %v102_v23, %v100_v21  ;;  %v189_v37 = vld [vmem:[#allocation3] sm:$0x1] }
  0x34   :  { %v190_v39 = vsel %vm86_vm0, %v189_v37, 0.0 }
  0x35   :  { %v104_v25 = vsub.f32 0.0, %v103_v24 }
  0x37   :  { %v113_v26 = vmul.f32 %v104_v25, %v93_v3 }
  0x39   :  { %v115_v27 = vsel %vm114_vm1, %v113_v26, 0.0 }
  0x3a   :  { %v116_v28 = vrot.slane %v115_v27, 4 }
  0x3c   :  { %v117_v29 = vadd.f32 %v116_v28, %v115_v27 }
  0x3e   :  { %v118_v30 = vrot.slane %v117_v29, 2 }
  0x40   :  { %v119_v31 = vadd.f32 %v118_v30, %v117_v29 }
  0x42   :  { %v120_v32 = vrot.slane %v119_v31, 1 }
  0x44   :  { %v121_v34 = vadd.f32 %v120_v32, %v119_v31 }
  0x46   :  { %v122_v35 = vadd.f32 %v121_v34, %v112_v33 }
  0x48   :  { %124 = vst.msk [vmem:[#allocation2] sm:$0x1] %vm86_vm0, %v122_v35 }
  0x4f   :  { %v177_v36 = vld [vmem:[#allocation2] sm:$0x1] }
  0x50   :  { %v179_v38 = vsel %vm86_vm0, %v177_v36, 0.0 }
  0x51   :  { %180 = vadd.xlane.f32.xlu0 %v179_v38 }
  0x55   :  { %191 = vadd.xlane.f32.xlu0 %v190_v39 }
  0xda   :  { %v181_v40 = vpop.xlane.xlu0 %180 }
  0xdb   :  { %v182_v41 = vrot.slane %v181_v40, 4 }
  0xdd   :  { %v183_v42 = vadd.f32 %v182_v41, %v181_v40 }
  0xde   :  { %v192_v43 = vpop.xlane.xlu0 %191 }
  0xdf   :  { %v184_v44 = vrot.slane %v183_v42, 2  ;;  %v193_v45 = vrot.slane %v192_v43, 4 }
  0xe1   :  { %v194_v46 = vadd.f32 %v193_v45, %v192_v43  ;;  %v185_v47 = vadd.f32 %v184_v44, %v183_v42 }
  0xe3   :  { %v195_v48 = vrot.slane %v194_v46, 2  ;;  %v186_v49 = vrot.slane %v185_v47, 1 }
  0xe5   :  { %v196_v50 = vadd.f32 %v195_v48, %v194_v46  ;;  %v187_v51 = vadd.f32 %v186_v49, %v185_v47 }
  0xe7   :  { %233 = vpush %v187_v51  ;;  %v197_v52 = vrot.slane %v196_v50, 1 }
  0xe9   :  { %v198_v53 = vadd.f32 %v197_v52, %v196_v50 }
  0xeb   :  { %235 = vpush %v198_v53 }
 0x118   :  { %s234_s1 = spop %233 }
 0x119   :  { %v204_v57 = vstv %s234_s1 }
 0x11c   :  { %s236_s24 = spop %235 }
 0x11d   :  { %v202_v56 = vstv %s236_s24 }
 0x11e   :  { %v203_v58 = vsel %vm201_vm2, %v202_v56, 0.0 }
 0x11f   :  { %v205_v59 = vsel %vm200_vm3, %v204_v57, %v203_v58 }
 0x120   :  { %206 = vst [vmem:[#allocation9] sm:$0x1] %v205_v59 }
 0x121   :  { %296 = shalt.err (!%p293_p0)
}
 0x122   :  { %216 = dma.vmem_to_hbm [thread:$0]  %s214_s23, 16, %s358_s3, [#allocation6]  }
 0x123   :  { %309 = dma.done.wait [#allocation6], 16  }
 0x124   :  { %310 = vsyncadd [#allocation6], 4294967280 }
 0x125   :  { %220 = vsyncpa [#allocation5], 1 }
 0x126   :  { %221 = vsyncpa [#allocation8], 1 }
 0x127   :  { %222 = vsyncpa [#allocation6], 1 }

</bundles_post_ra>
